<compile_context>
chip_gen: v6e
topology: v6e:2x2x1
jax: 0.10.0
libtpu: 0.0.40
codegen_flags: <defaults>
</compile_context>

<pallas_src>
import functools
import math

import jax
import jax.numpy as jnp
from jax.experimental import pallas as pl
from jax.experimental.pallas import tpu as pltpu

_LANE = 128
_ROW_UNIT = 32                           # sublane packing unit for f32 (8), bf16 (16), int8 (32)
_VMEM_BUDGET_BYTES = 28 * 1024 * 1024    # target double-buffered working set (v7x-safe)
_VMEM_LIMIT_BYTES = 32 * 1024 * 1024
_MIN_PALLAS_ELEMS = 65536                # below this, plain XLA elementwise is faster


def _round_up(x, m):
    return ((x + m - 1) // m) * m


def _rounded(q, rounding_mode):
    if rounding_mode is None:
        return q
    if rounding_mode == "floor":
        return jnp.floor(q)
    if rounding_mode == "trunc":
        return jnp.trunc(q)
    raise ValueError(f"unsupported rounding_mode: {rounding_mode!r}")


def _div_kernel(num_ref, den_ref, o_ref, *, rounding_mode, num_is_scalar, den_is_scalar):
    # Scalar operands live in SMEM as a single f32; full operands are VMEM tiles (either
    # (tile_rows, 128) or flat 1-D chunks).  Compute in f32 (exact for the float path;
    # torch-compatible for int floor/trunc within f32-exact range), cast on store.
    num = (num_ref[0] if num_is_scalar else num_ref[...]).astype(jnp.float32)
    den = (den_ref[0] if den_is_scalar else den_ref[...]).astype(jnp.float32)
    q = _rounded(num / den, rounding_mode)
    o_ref[...] = q.astype(o_ref.dtype)


@functools.lru_cache(maxsize=1)
def _num_tensorcores():
    """Best-effort TensorCores-per-chip count. Defaults to 2 (megacore-safe: forces a split
    so both v7x TCs get work; on v5e/v6e the extra grid step costs only ~0.35 us)."""
    try:
        info = pltpu.get_tpu_info()
    except Exception:
        info = None
    if info is not None:
        for attr in ("num_cores", "num_tensorcores", "tensor_cores_per_chip",
                     "cores_per_chip", "core_count"):
            v = getattr(info, attr, None)
            if isinstance(v, int) and v > 0:
                return v
    return 2


def _choose_tile_rows(rows, row_cap, min_blocks):
    want = _round_up(pl.cdiv(rows, max(1, min_blocks)), _ROW_UNIT)
    return max(_ROW_UNIT, min(row_cap, want))


def aten_div(input_tensor, other_tensor, rounding_mode=None, *,
             min_pallas_elems=_MIN_PALLAS_ELEMS):
    """torch.div(input, other, rounding_mode=...) semantics."""
    if rounding_mode not in (None, "floor", "trunc"):
        raise ValueError(f"unsupported rounding_mode: {rounding_mode!r}")

    num = jnp.asarray(input_tensor)
    den = jnp.asarray(other_tensor)
    out_shape = jnp.broadcast_shapes(num.shape, den.shape)
    res_dtype = jnp.result_type(num, den)
    if rounding_mode is None and not jnp.issubdtype(res_dtype, jnp.floating):
        out_dtype = jnp.float32  # torch.div promotes integer true-division to float
    else:
        out_dtype = res_dtype
    # TODO(synk): int floor/trunc division goes through f32; |values| > 2^24 lose exactness.
    # TODO(synk): fp16/bf16 true division is computed in f32 and downcast (torch computes in
    #             the half dtype), so results may differ from torch by ~1 ULP.

    n = math.prod(out_shape)
    if n == 0:
        return jnp.zeros(out_shape, out_dtype)

    # Fast path: kernel launch + pipeline prologue dominates for small arrays.
    if n < min_pallas_elems:
        q = _rounded(num.astype(jnp.float32) / den.astype(jnp.float32), rounding_mode)
        return jnp.broadcast_to(q.astype(out_dtype), out_shape)

    num_is_scalar = num.size == 1
    den_is_scalar = den.size == 1

    def _prep_full(x):
        # TODO(synk): for suffix-only (bias-style) broadcasts, tile the small operand via the
        #             BlockSpec index_map instead of materializing broadcast_to in HBM.
        if x.shape != out_shape:
            x = jnp.broadcast_to(x, out_shape)
        return x.reshape(-1)

    # Constant-byte blocks: pick tile_rows so the double-buffered footprint of every
    # VMEM-resident array (non-scalar inputs + output) stays within _VMEM_BUDGET_BYTES.
    itemsizes = [jnp.dtype(out_dtype).itemsize]
    if not num_is_scalar:
        itemsizes.append(jnp.dtype(num.dtype).itemsize)
    if not den_is_scalar:
        itemsizes.append(jnp.dtype(den.dtype).itemsize)
    bytes_per_row = _LANE * sum(itemsizes)
    row_cap = max(_ROW_UNIT,
                  (_VMEM_BUDGET_BYTES // (2 * bytes_per_row)) // _ROW_UNIT * _ROW_UNIT)

    rows = pl.cdiv(n, _LANE)
    min_blocks = 2 if _num_tensorcores() >= 2 else 1  # feed both TCs on megacore parts only
    tile_rows = _choose_tile_rows(rows, row_cap, min_blocks)

    aligned = (n % _LANE == 0)
    if aligned:
        # Lane-dense 2-D view: (rows, 128) array tiled into (tile_rows, 128) blocks.
        full_spec = pl.BlockSpec((tile_rows, _LANE), lambda i: (i, 0))
        call_out_shape = jax.ShapeDtypeStruct((rows, _LANE), out_dtype)
        grid = (pl.cdiv(rows, tile_rows),)

        def _view(x_flat):
            return x_flat.reshape(rows, _LANE)
    else:
        # Ragged numel: flat 1-D view; the <128-element tail is handled by Pallas' OOB
        # read-padding and masked stores -> no O(N) pad and no post-kernel slice.
        block_elems = tile_rows * _LANE
        full_spec = pl.BlockSpec((block_elems,), lambda i: (i,))
        call_out_shape = jax.ShapeDtypeStruct((n,), out_dtype)
        grid = (pl.cdiv(n, block_elems),)

        def _view(x_flat):
            return x_flat

    smem_spec = pl.BlockSpec(memory_space=pltpu.MemorySpace.SMEM)

    operands = []
    in_specs = []
    if num_is_scalar:
        operands.append(num.reshape(-1).astype(jnp.float32))
        in_specs.append(smem_spec)
    else:
        operands.append(_view(_prep_full(num)))
        in_specs.append(full_spec)
    if den_is_scalar:
        operands.append(den.reshape(-1).astype(jnp.float32))
        in_specs.append(smem_spec)
    else:
        operands.append(_view(_prep_full(den)))
        in_specs.append(full_spec)

    kernel = functools.partial(
        _div_kernel,
        rounding_mode=rounding_mode,
        num_is_scalar=num_is_scalar,
        den_is_scalar=den_is_scalar,
    )

    out = pl.pallas_call(
        kernel,
        out_shape=call_out_shape,
        grid_spec=pltpu.PrefetchScalarGridSpec(
            num_scalar_prefetch=0,
            grid=grid,
            in_specs=in_specs,
            out_specs=full_spec,
        ),
        compiler_params=pltpu.CompilerParams(
            # "parallel" shards the grid across v7x's two TensorCores; it is measured-neutral
            # on single-TC v5e/v6e, so keep it (do not simplify to "arbitrary").
            dimension_semantics=("parallel",),
            vmem_limit_bytes=_VMEM_LIMIT_BYTES,
        ),
    )(*operands)

    return out.reshape(out_shape)


if __name__ == "__main__":
    key = jax.random.PRNGKey(0)
    k1, k2, k3, k4 = jax.random.split(key, 4)

    def reference(a, b, mode):
        a = jnp.asarray(a)
        b = jnp.asarray(b)
        shp = jnp.broadcast_shapes(a.shape, b.shape)
        rd = jnp.result_type(a, b)
        od = rd if (jnp.issubdtype(rd, jnp.floating) or mode is not None) else jnp.float32
        q = _rounded(a.astype(jnp.float32) / b.astype(jnp.float32), mode)
        return jnp.broadcast_to(q.astype(od), shp)

    ok = True
    modes = (None, "floor", "trunc")

    # Tiny shape from the original torch test (fast path).
    x_small = jax.random.normal(k1, (2, 4, 16, 16), dtype=jnp.float32) * 5.0
    y_small = jax.random.normal(k2, (2, 4, 16, 16), dtype=jnp.float32)
    y_small = jnp.where(jnp.abs(y_small) < 0.25, 0.25, y_small)

    # Larger shapes exercising the Pallas kernel (aligned 2-D, ragged 1-D, SMEM-scalar, bf16).
    x_big = jax.random.normal(k3, (8, 64, 256), dtype=jnp.float32) * 5.0               # 131072 elems
    y_big = jnp.abs(jax.random.normal(k4, (8, 64, 256), dtype=jnp.float32)) + 0.5
    x_odd = jax.random.normal(k3, (3, 7, 61, 53), dtype=jnp.float32) * 3.0             # 67893 elems (% 128 != 0)
    y_odd = jnp.abs(jax.random.normal(k4, (3, 7, 61, 53), dtype=jnp.float32)) + 0.5
    y_scalar = jnp.float32(2.5)
    x_bf = x_big.astype(jnp.bfloat16)
    y_bf = y_big.astype(jnp.bfloat16)

    cases = [
        (x_small, y_small),    # fast path: tensor / tensor
        (x_small, y_scalar),   # fast path: tensor / scalar
        (x_big, y_big),        # pallas 2-D: tensor / tensor, lane-aligned f32
        (x_big, y_scalar),     # pallas 2-D: tensor / scalar (SMEM denominator)
        (y_scalar, y_big),     # pallas 2-D: scalar / tensor (SMEM numerator)
        (x_odd, y_odd),        # pallas 1-D ragged: tensor / tensor, no pad/slice
        (x_odd, y_scalar),     # pallas 1-D ragged: tensor / scalar
        (x_bf, y_bf),          # pallas 2-D: bf16 (dtype-scaled tile_rows)
    ]

    for mode in modes:
        for a, b in cases:
            out = jax.block_until_ready(aten_div(a, b, rounding_mode=mode))
            ref = reference(a, b, mode)
            ok &= bool(out.shape == ref.shape and out.dtype == ref.dtype)
            tol = 1e-2 if out.dtype == jnp.bfloat16 else 1e-6
            ok &= bool(jnp.allclose(out.astype(jnp.float32), ref.astype(jnp.float32),
                                    atol=tol, rtol=tol))

    # Integer inputs: rounding_mode=None promotes to float; floor/trunc stay integer.
    xi = jax.random.randint(k1, (2, 4, 16, 16), -20, 20, dtype=jnp.int32)
    yi = jax.random.randint(k2, (2, 4, 16, 16), 1, 7, dtype=jnp.int32)
    out_true = jax.block_until_ready(aten_div(xi, yi, rounding_mode=None))
    ok &= bool(out_true.dtype == jnp.float32)
    ok &= bool(jnp.allclose(out_true, xi.astype(jnp.float32) / yi.astype(jnp.float32)))
    out_floor = jax.block_until_ready(aten_div(xi, yi, rounding_mode="floor"))
    ok &= bool(out_floor.dtype == jnp.int32)
    ok &= bool(jnp.array_equal(out_floor, jnp.floor_divide(xi, yi)))

    print("KERNEL_OK" if ok else "KERNEL_MISMATCH")
</pallas_src>

<mosaic_0001>
module attributes {stable_mosaic.version = 11 : i64} {
  func.func @_div_kernel(%arg0: i32, %arg1: memref<512x128xf32, #tpu.memory_space<vmem>>, %arg2: memref<512x128xf32, #tpu.memory_space<vmem>>, %arg3: memref<512x128xf32, #tpu.memory_space<vmem>>) attributes {dimension_semantics = [#tpu.dimension_semantics<parallel>], iteration_bounds = array<i64: 2>, scalar_prefetch = 0 : i64, scratch_operands = 0 : i64, tpu.core_type = #tpu.core_type<tc>, window_params = [{transform_indices = @transform_0, window_bounds = array<i64: 512, 128>}, {transform_indices = @transform_1, window_bounds = array<i64: 512, 128>}, {transform_indices = @transform_2, window_bounds = array<i64: 512, 128>}]} {
    %c0 = arith.constant 0 : index
    %c0_0 = arith.constant 0 : index
    %0 = vector.load %arg1[%c0, %c0_0] : memref<512x128xf32, #tpu.memory_space<vmem>>, vector<512x128xf32>
    %c0_1 = arith.constant 0 : index
    %c0_2 = arith.constant 0 : index
    %1 = vector.load %arg2[%c0_1, %c0_2] : memref<512x128xf32, #tpu.memory_space<vmem>>, vector<512x128xf32>
    %2 = arith.divf %0, %1 : vector<512x128xf32>
    %c0_3 = arith.constant 0 : index
    %c0_4 = arith.constant 0 : index
    %3 = vector.load %arg3[%c0_3, %c0_4] : memref<512x128xf32, #tpu.memory_space<vmem>>, vector<512x128xf32>
    tpu.vector_store %arg3[%c0_3, %c0_4], %2 {strides = array<i32>} : memref<512x128xf32, #tpu.memory_space<vmem>>, vector<512x128xf32>,
    return
  }
  func.func @transform_0(%arg0: i32) -> (i32, i32) {
    %c0_i32 = arith.constant 0 : i32
    %c0_i32_0 = arith.constant 0 : i32
    return %arg0, %c0_i32 : i32, i32
  }
  func.func @transform_1(%arg0: i32) -> (i32, i32) {
    %c0_i32 = arith.constant 0 : i32
    %c0_i32_0 = arith.constant 0 : i32
    return %arg0, %c0_i32 : i32, i32
  }
  func.func @transform_2(%arg0: i32) -> (i32, i32) {
    %c0_i32 = arith.constant 0 : i32
    %c0_i32_0 = arith.constant 0 : i32
    return %arg0, %c0_i32 : i32, i32
  }
}

</mosaic_0001>

<bundles_post_ra>
// kernel: tpu_custom_call.1
= control target key start
LH: loop header
LB: loop body
LE: loop exit
PB: predicated region body
PF: predicated region fallthrough
CT: control target
= control target key end

     0   :  { %7 = vsyncpa [#allocation3], 0  ;;  %s1409_s0 = inlined_call_operand.hbm [shape: f32[1024,128], index: 0, kind: input, shape index: {}]   ;;  %s1410_s1 = inlined_call_operand.hbm [shape: f32[1024,128], index: 1, kind: input, shape index: {}]   ;;  %s1411_s2 = inlined_call_operand.hbm [shape: f32[1024,128], index: 2, kind: output, shape index: {}]  }
   0x1   :  { %9 = vsyncpa [#allocation3 + $0x1], 0 }
   0x2   :  { %10 = vsyncpa [#allocation6], 0 }
   0x3   :  { %12 = vsyncpa [#allocation6 + $0x1], 0 }
   0x4   :  { %13 = vsyncpa [#allocation4], 0 }
   0x5   :  { %15 = vsyncpa [#allocation4 + $0x1], 0  ;;  %s987_s9 = smov 0   ;;  %s989_s10 = smov 0  }
   0x6   :  { %s991_s11 = smov 0   ;;  %s993_s12 = smov 0  }
   0x7 LB: > { %s1008_s13 = sadd.s32 4294967295, %s963_s12   ;;  %s635_s14 = sadd.s32 4294967294, %s963_s12   ;;  %s963_s12 = sphi %s993_s12, %s1427_s12   ;;  %s959_s11 = sphi %s991_s11, %s1426_s11   ;;  %s955_s10 = sphi %s989_s10, %s1425_s10   ;;  %s951_s9 = sphi %s987_s9, %s1424_s9  }
   0x8   : > { %s1012_s15 = sadd.s32 1, %s963_s12   ;;  %s28_s16 = sadd.s32 1, %s959_s11 }
   0x9   : > { %s25_s17 = ssub.s32 %s963_s12, %s1012_s15  ;;  %p35_p0 = scmp.ne.s32.totalorder %s959_s11, %s955_s10 }
   0xa   : > { %p26_p1 = scmp.eq.s32.totalorder %s25_s17, 0  ;;  %p36_p2 = scmp.eq.s32.totalorder %s963_s12, 0 }
   0xb   : > { %p41_p3 = scmp.ne.s32.totalorder %s955_s10, %s951_s9  ;;  %p42_p4 = scmp.eq.s32.totalorder %s1008_s13, 0 }
   0xc   : > { %s1024_s18 = scalar_select %p26_p1, %s959_s11, %s28_s16  }
   0xd   : > { %p1026_p5 = por %p36_p2, %p35_p0  ;;  %p1030_p6 = por %p42_p4, %p41_p3 }
   0xe   : > { %p91_p7 = scmp.eq.s32.totalorder %s1008_s13, 1  ;;  %p97_p8 = scmp.eq.s32.totalorder %s635_s14, 1 }
   0xf   : > { %s1415_s20 = scalar_select %p1030_p6, 1, 0 }
  0x10   : > { %p673_p10 = scmp.lt.s32.totalorder %s963_s12, 2  ;;  %p1037_p11 = por %p91_p7, %p35_p0 }
  0x11   : > { %p1041_p12 = por %p97_p8, %p41_p3  ;;  %s1046_s23 = sand.u32 1, %s959_s11  }
  0x12   : > { %s1416_s21 = scalar_select %p1037_p11, 1, 0 }
  0x13   : > { %s1417_s22 = scalar_select %p1041_p12, 1, 0 }
  0x14   : > { %s653_s24 = sshll.u32 %s963_s12, 13  ;;  %s638_s25 = sshll.u32 %s1046_s23, 9 }
  0x15   : > { %s1055_s28 = scalar_lea.hbm %s1409_s0, %s653_s24  ;;  %s121_s29 = scalar_lea.vmem [#allocation2], %s638_s25 }
  0x16   : > { %s128_s30 = sshll.u32 %s121_s29, 4  ;;  %p1061_p13 = pnand %p673_p10, %p1026_p5  ;;  %s1065_s30 = int_to_ptr.vmem [resolvable:$true] %s128_s30 }
  0x17   : > { %s118_s4 = scalar_lea.sflag [#allocation3], %s1046_s23  ;;  %s839_s5 = scalar_lea.hbm %s1055_s28, 8192 }
  0x18   : > { %p840_p0 = scmp.ne.s32.totalorder %s1055_s28, %s839_s5  ;;  %p841_p1 = pneg %p1061_p13 }
  0x19   : > { %s844_s8 = scalar_lea.hbm %s1409_s0, 16384  ;;  %p845_p4 = scmp.lt.s32.totalorder %s1055_s28, %s1409_s0 }
  0x1a   : > { %p842_p2 = pnand %p841_p1, %p840_p0  ;;  %p846_p5 = scmp.lt.s32.totalorder %s844_s8, %s839_s5 }
  0x1c   : > { %p843_p3 = pneg %p842_p2  ;;  %p847_p7 = por %p846_p5, %p845_p4 }
  0x1e   : > { %p848_p8 = pnand %p847_p7, %p843_p3 }
  0x20   : > { %851 = shalt.err (!%p848_p8)
}
  0x21   : > { %s852_s17 = scalar_lea.vmem %s1065_s30, 8192  ;;  %s965_s19 = smov [#allocation2]  }
  0x22   : > { %p853_p10 = scmp.ne.s32.totalorder %s1065_s30, %s852_s17  ;;  %s857_s26 = sshll.u32 %s965_s19, 4  ;;  %s858_s26 = int_to_ptr.vmem [resolvable:$false] %s857_s26 }
  0x23   : > { %s859_s27 = scalar_lea.vmem %s858_s26, 16384  ;;  %p860_p9 = scmp.lt.s32.totalorder %s1065_s30, %s858_s26 }
  0x24   : > { %p855_p0 = pnand %p853_p10, %p841_p1  ;;  %p861_p12 = scmp.lt.s32.totalorder %s859_s27, %s852_s17 }
  0x26   : > { %p856_p2 = pneg %p855_p0  ;;  %p862_p11 = por %p861_p12, %p860_p9 }
  0x28   : > { %p863_p4 = pnand %p862_p11, %p856_p2 }
  0x2a   : > { %866 = shalt.err (!%p863_p4)
}
  0x2b   : > { %s966_s29 = smov 128   ;;  %s967_s5 = smov 8  }
  0x2c   : > { %665 = dma.hbm_to_vmem [thread:$0]  (!%p1061_p13), %s1055_s28, 8192, %s1065_s30, %s118_s4, %s966_s29, %s966_s29, %s967_s5  }
  0x2d   : > { %p644_p9 = scmp.ge.s32.totalorder %s963_s12, 1  ;;  %p157_p11 = scmp.lt.s32.totalorder %s963_s12, 3 }
  0x2e   : > { %s1108_s14 = scalar_lea.hbm %s1410_s1, %s653_s24  ;;  %s142_s16 = scalar_lea.vmem [#allocation5], %s638_s25 }
  0x2f   : > { %p1099_p12 = pnand %p644_p9, %p157_p11  ;;  %s149_s17 = sshll.u32 %s142_s16, 4  ;;  %s1112_s17 = int_to_ptr.vmem [resolvable:$true] %s149_s17 }
  0x30   : > { %s139_s28 = scalar_lea.sflag [#allocation6], %s1046_s23  ;;  %s867_s30 = scalar_lea.hbm %s1108_s14, 8192 }
  0x31   : > { %p868_p3 = scmp.ne.s32.totalorder %s1108_s14, %s867_s30  ;;  %s872_s24 = scalar_lea.hbm %s1410_s1, 16384 }
  0x32   : > { %p873_p8 = scmp.lt.s32.totalorder %s1108_s14, %s1410_s1  ;;  %p874_p10 = scmp.lt.s32.totalorder %s872_s24, %s867_s30 }
  0x33   : > { %p870_p5 = pnand %p868_p3, %p841_p1 }
  0x34   : > { %p875_p0 = por %p874_p10, %p873_p8 }
  0x35   : > { %p871_p7 = pneg %p870_p5 }
  0x37   : > { %p876_p2 = pnand %p875_p0, %p871_p7 }
  0x39   : > { %879 = shalt.err (!%p876_p2)
}
  0x3a   : > { %s880_s23 = scalar_lea.vmem %s1112_s17, 8192  ;;  %s968_s25 = smov [#allocation5]  }
  0x3b   : > { %p881_p4 = scmp.ne.s32.totalorder %s1112_s17, %s880_s23  ;;  %s885_s7 = sshll.u32 %s968_s25, 4  ;;  %s886_s7 = int_to_ptr.vmem [resolvable:$false] %s885_s7 }
  0x3c   : > { %s887_s8 = scalar_lea.vmem %s886_s7, 16384  ;;  %p888_p3 = scmp.lt.s32.totalorder %s1112_s17, %s886_s7 }
  0x3d   : > { %p883_p9 = pnand %p881_p4, %p841_p1  ;;  %p889_p5 = scmp.lt.s32.totalorder %s887_s8, %s880_s23 }
  0x3f   : > { %p884_p11 = pneg %p883_p9  ;;  %p890_p6 = por %p889_p5, %p888_p3 }
  0x41   : > { %p891_p8 = pnand %p890_p6, %p884_p11 }
  0x43   : > { %894 = shalt.err (!%p891_p8)
}
  0x44   : > { %668 = dma.hbm_to_vmem [thread:$0]  (!%p1061_p13), %s1108_s14, 8192, %s1112_s17, %s139_s28, %s966_s29, %s966_s29, %s967_s5  }
  0x45   : > { %161 = sbr.rel (%p1099_p12) target bundleno = 171 (0xab), region = 28  ;;  %s1143_s16 = sand.u32 (!%p1099_p12), 1, %s955_s10  }
  0x46   : > { %s1146_s30 = sshll.u32 (!%p1099_p12), %s1143_s16, 9  ;;  %s164_s4 = scalar_lea.sflag (!%p1099_p12), [#allocation3], %s1143_s16 }
  0x47   : > { %s1150_s3 = scalar_lea.vmem (!%p1099_p12), [#allocation2], %s1146_s30  ;;  %p1420_p6 = scmp.ne.s32.totalorder (!%p1099_p12), %s1415_s20, 0 }
  0x4a   : > { %938 = dma.done.wait (%p1420_p6), %s164_s4, 8192  }
  0x4b   : > { %940 = vsyncadd (%p1420_p6), %s164_s4, 4294959104  ;;  %s173_s29 = scalar_lea.sflag [#allocation6], %s1143_s16  ;;  %s1158_s5 = scalar_lea.vmem [#allocation5], %s1146_s30 }
  0x4c   : > { %942 = dma.done.wait (%p1420_p6), %s173_s29, 8192  }
  0x4d   : > { %944 = vsyncadd (%p1420_p6), %s173_s29, 4294959104  ;;  %v269_v0 = vld [vmem:[%s1158_s5] sm:$0xff]  ;;  %v270_v1 = vld [vmem:[%s1158_s5 + $0x8] sm:$0xff]  ;;  %s1189_s20 = scalar_lea.vmem [#allocation7], %s1146_s30  ;;  %s655_s6 = sshll.u32 %s1008_s13, 13 }
  0x4e   : > { %711 = vrcp.f32 %v269_v0  ;;  %v271_v2 = vld [vmem:[%s1158_s5 + $0x10] sm:$0xff]  ;;  %v272_v3 = vld [vmem:[%s1158_s5 + $0x18] sm:$0xff]  ;;  %v273_v4 = vld [vmem:[%s1158_s5 + $0x20] sm:$0xff]  ;;  %s539_s14 = sshll.u32 %s1189_s20, 4  ;;  %s1361_s19 = scalar_lea.hbm %s1411_s2, %s655_s6  ;;  %s1363_s14 = int_to_ptr.vmem [resolvable:$true] %s539_s14 }
  0x4f   : > { %713 = vrcp.f32 %v270_v1  ;;  %v274_v5 = vld [vmem:[%s1158_s5 + $0x28] sm:$0xff]  ;;  %v275_v6 = vld [vmem:[%s1158_s5 + $0x30] sm:$0xff]  ;;  %v276_v7 = vld [vmem:[%s1158_s5 + $0x38] sm:$0xff]  ;;  %s526_s13 = scalar_lea.sflag [#allocation4], %s1143_s16  ;;  %s895_s24 = scalar_lea.vmem %s1363_s14, 8192 }
  0x50   : > { %715 = vrcp.f32 %v271_v2  ;;  %v277_v8 = vld [vmem:[%s1158_s5 + $0x40] sm:$0xff]  ;;  %v278_v9 = vld [vmem:[%s1158_s5 + $0x48] sm:$0xff]  ;;  %v279_v10 = vld [vmem:[%s1158_s5 + $0x50] sm:$0xff]  ;;  %p896_p13 = scmp.ne.s32.totalorder %s1363_s14, %s895_s24  ;;  %p1421_p1 = scmp.ne.s32.totalorder %s1416_s21, 0 }
  0x51   : > { %717 = vrcp.f32 %v272_v3  ;;  %v280_v11 = vld [vmem:[%s1158_s5 + $0x58] sm:$0xff]  ;;  %v281_v12 = vld [vmem:[%s1158_s5 + $0x60] sm:$0xff]  ;;  %v282_v13 = vld [vmem:[%s1158_s5 + $0x68] sm:$0xff]  ;;  %s969_s26 = smov [#allocation7]  }
  0x52   : > { %719 = vrcp.f32 %v273_v4  ;;  %v205_v14 = vld [vmem:[%s1150_s3] sm:$0xff]  ;;  %v283_v15 = vld [vmem:[%s1158_s5 + $0x70] sm:$0xff]  ;;  %v206_v16 = vld [vmem:[%s1150_s3 + $0x8] sm:$0xff]  ;;  %p897_p12 = pnand %p896_p13, %p1421_p1  ;;  %s899_s27 = sshll.u32 %s969_s26, 4  ;;  %s900_s27 = int_to_ptr.vmem [resolvable:$false] %s899_s27 }
  0x53   : > { %721 = vrcp.f32 %v274_v5  ;;  %v284_v17 = vld [vmem:[%s1158_s5 + $0x78] sm:$0xff]  ;;  %v207_v19 = vld [vmem:[%s1150_s3 + $0x10] sm:$0xff]  ;;  %v285_v20 = vld [vmem:[%s1158_s5 + $0x80] sm:$0xff]  ;;  %s901_s23 = scalar_lea.vmem %s900_s27, 16384  ;;  %p902_p10 = scmp.lt.s32.totalorder %s1363_s14, %s900_s27 }
  0x54   : > { %723 = vrcp.f32 %v275_v6  ;;  %v208_v23 = vld [vmem:[%s1150_s3 + $0x18] sm:$0xff]  ;;  %v286_v24 = vld [vmem:[%s1158_s5 + $0x88] sm:$0xff]  ;;  %v209_v27 = vld [vmem:[%s1150_s3 + $0x20] sm:$0xff]  ;;  %p898_p7 = pneg %p897_p12  ;;  %p903_p0 = scmp.lt.s32.totalorder %s901_s23, %s895_s24 }
  0x55   : > { %725 = vrcp.f32 %v276_v7  ;;  %v287_v28 = vld [vmem:[%s1158_s5 + $0x90] sm:$0xff]  ;;  %v210_v31 = vld [vmem:[%s1150_s3 + $0x28] sm:$0xff]  ;;  %v288_v32 = vld [vmem:[%s1158_s5 + $0x98] sm:$0xff] }
  0x56   : > { %727 = vrcp.f32 %v277_v8  ;;  %v211_v35 = vld [vmem:[%s1150_s3 + $0x30] sm:$0xff]  ;;  %v289_v36 = vld [vmem:[%s1158_s5 + $0xa0] sm:$0xff]  ;;  %v212_v39 = vld [vmem:[%s1150_s3 + $0x38] sm:$0xff]  ;;  %p904_p2 = por %p903_p0, %p902_p10 }
  0x57   : > { %729 = vrcp.f32 %v278_v9  ;;  %v290_v40 = vld [vmem:[%s1158_s5 + $0xa8] sm:$0xff]  ;;  %v213_v43 = vld [vmem:[%s1150_s3 + $0x40] sm:$0xff]  ;;  %v291_v44 = vld [vmem:[%s1158_s5 + $0xb0] sm:$0xff] }
  0x58   : > { %731 = vrcp.f32 %v279_v10  ;;  %v214_v47 = vld [vmem:[%s1150_s3 + $0x48] sm:$0xff]  ;;  %v292_v48 = vld [vmem:[%s1158_s5 + $0xb8] sm:$0xff]  ;;  %v215_v51 = vld [vmem:[%s1150_s3 + $0x50] sm:$0xff]  ;;  %p905_p4 = pnand %p904_p2, %p898_p7 }
  0x59   : > { %733 = vrcp.f32 %v280_v11  ;;  %v293_v52 = vld [vmem:[%s1158_s5 + $0xc0] sm:$0xff]  ;;  %v216_v55 = vld [vmem:[%s1150_s3 + $0x58] sm:$0xff]  ;;  %v294_v56 = vld [vmem:[%s1158_s5 + $0xc8] sm:$0xff] }
  0x5a   : > { %735 = vrcp.f32 %v281_v12  ;;  %v217_v59 = vld [vmem:[%s1150_s3 + $0x60] sm:$0xff]  ;;  %v295_v60 = vld [vmem:[%s1158_s5 + $0xd0] sm:$0xff]  ;;  %v218_v63 = vld [vmem:[%s1150_s3 + $0x68] sm:$0xff] }
  0x5b   : > { %v712_v18 = vpop.eup %711  ;;  %737 = vrcp.f32 %v282_v13  ;;  %v296_v0 = vld [vmem:[%s1158_s5 + $0xd8] sm:$0xff]  ;;  %v219_v3 = vld [vmem:[%s1150_s3 + $0x70] sm:$0xff]  ;;  %v297_v4 = vld [vmem:[%s1158_s5 + $0xe0] sm:$0xff] }
  0x5c   : > { %v714_v21 = vpop.eup %713  ;;  %v334_v22 = vmul.f32 %v712_v18, %v205_v14  ;;  %739 = vrcp.f32 %v283_v15  ;;  %v220_v7 = vld [vmem:[%s1150_s3 + $0x78] sm:$0xff]  ;;  %v298_v8 = vld [vmem:[%s1158_s5 + $0xe8] sm:$0xff]  ;;  %v221_v11 = vld [vmem:[%s1150_s3 + $0x80] sm:$0xff] }
  0x5d   : > { %v716_v25 = vpop.eup %715  ;;  %v336_v26 = vmul.f32 %v714_v21, %v206_v16  ;;  %741 = vrcp.f32 %v284_v17  ;;  %v299_v12 = vld [vmem:[%s1158_s5 + $0xf0] sm:$0xff]  ;;  %v222_v15 = vld [vmem:[%s1150_s3 + $0x88] sm:$0xff]  ;;  %v300_v16 = vld [vmem:[%s1158_s5 + $0xf8] sm:$0xff] }
  0x5e   : > { %v718_v29 = vpop.eup %717  ;;  %461 = vst [vmem:[%s1189_s20] sm:$0xff] %v334_v22  ;;  %v338_v30 = vmul.f32 %v716_v25, %v207_v19  ;;  %743 = vrcp.f32 %v285_v20  ;;  %v223_v19 = vld [vmem:[%s1150_s3 + $0x90] sm:$0xff]  ;;  %v301_v20 = vld [vmem:[%s1158_s5 + $0x100] sm:$0xff] }
  0x5f   : > { %v720_v33 = vpop.eup %719  ;;  %462 = vst [vmem:[%s1189_s20 + $0x8] sm:$0xff] %v336_v26  ;;  %v340_v34 = vmul.f32 %v718_v29, %v208_v23  ;;  %745 = vrcp.f32 %v286_v24  ;;  %v224_v23 = vld [vmem:[%s1150_s3 + $0x98] sm:$0xff]  ;;  %v302_v24 = vld [vmem:[%s1158_s5 + $0x108] sm:$0xff] }
  0x60   : > { %v722_v37 = vpop.eup %721  ;;  %463 = vst [vmem:[%s1189_s20 + $0x10] sm:$0xff] %v338_v30  ;;  %v342_v38 = vmul.f32 %v720_v33, %v209_v27  ;;  %747 = vrcp.f32 %v287_v28  ;;  %v225_v27 = vld [vmem:[%s1150_s3 + $0xa0] sm:$0xff]  ;;  %v303_v28 = vld [vmem:[%s1158_s5 + $0x110] sm:$0xff] }
  0x61   : > { %v724_v41 = vpop.eup %723  ;;  %464 = vst [vmem:[%s1189_s20 + $0x18] sm:$0xff] %v340_v34  ;;  %v344_v42 = vmul.f32 %v722_v37, %v210_v31  ;;  %749 = vrcp.f32 %v288_v32  ;;  %v226_v31 = vld [vmem:[%s1150_s3 + $0xa8] sm:$0xff]  ;;  %v304_v32 = vld [vmem:[%s1158_s5 + $0x118] sm:$0xff] }
  0x62   : > { %v726_v45 = vpop.eup %725  ;;  %465 = vst [vmem:[%s1189_s20 + $0x20] sm:$0xff] %v342_v38  ;;  %v346_v46 = vmul.f32 %v724_v41, %v211_v35  ;;  %751 = vrcp.f32 %v289_v36  ;;  %v227_v35 = vld [vmem:[%s1150_s3 + $0xb0] sm:$0xff]  ;;  %v305_v36 = vld [vmem:[%s1158_s5 + $0x120] sm:$0xff] }
  0x63   : > { %v728_v49 = vpop.eup %727  ;;  %466 = vst [vmem:[%s1189_s20 + $0x28] sm:$0xff] %v344_v42  ;;  %v348_v50 = vmul.f32 %v726_v45, %v212_v39  ;;  %753 = vrcp.f32 %v290_v40  ;;  %v228_v39 = vld [vmem:[%s1150_s3 + $0xb8] sm:$0xff]  ;;  %v306_v40 = vld [vmem:[%s1158_s5 + $0x128] sm:$0xff] }
  0x64   : > { %v730_v53 = vpop.eup %729  ;;  %467 = vst [vmem:[%s1189_s20 + $0x30] sm:$0xff] %v346_v46  ;;  %v350_v54 = vmul.f32 %v728_v49, %v213_v43  ;;  %755 = vrcp.f32 %v291_v44  ;;  %v229_v43 = vld [vmem:[%s1150_s3 + $0xc0] sm:$0xff]  ;;  %v307_v44 = vld [vmem:[%s1158_s5 + $0x130] sm:$0xff] }
  0x65   : > { %v732_v57 = vpop.eup %731  ;;  %468 = vst [vmem:[%s1189_s20 + $0x38] sm:$0xff] %v348_v50  ;;  %v352_v58 = vmul.f32 %v730_v53, %v214_v47  ;;  %757 = vrcp.f32 %v292_v48  ;;  %v230_v47 = vld [vmem:[%s1150_s3 + $0xc8] sm:$0xff]  ;;  %v308_v48 = vld [vmem:[%s1158_s5 + $0x138] sm:$0xff] }
  0x66   : > { %v734_v61 = vpop.eup %733  ;;  %469 = vst [vmem:[%s1189_s20 + $0x40] sm:$0xff] %v350_v54  ;;  %v354_v62 = vmul.f32 %v732_v57, %v215_v51  ;;  %759 = vrcp.f32 %v293_v52  ;;  %v231_v51 = vld [vmem:[%s1150_s3 + $0xd0] sm:$0xff]  ;;  %v309_v52 = vld [vmem:[%s1158_s5 + $0x140] sm:$0xff] }
  0x67   : > { %v736_v1 = vpop.eup %735  ;;  %470 = vst [vmem:[%s1189_s20 + $0x48] sm:$0xff] %v352_v58  ;;  %v356_v2 = vmul.f32 %v734_v61, %v216_v55  ;;  %761 = vrcp.f32 %v294_v56  ;;  %v232_v55 = vld [vmem:[%s1150_s3 + $0xd8] sm:$0xff]  ;;  %v310_v56 = vld [vmem:[%s1158_s5 + $0x148] sm:$0xff] }
  0x68   : > { %v738_v5 = vpop.eup %737  ;;  %471 = vst [vmem:[%s1189_s20 + $0x50] sm:$0xff] %v354_v62  ;;  %v358_v6 = vmul.f32 %v736_v1, %v217_v59  ;;  %763 = vrcp.f32 %v295_v60  ;;  %v233_v59 = vld [vmem:[%s1150_s3 + $0xe0] sm:$0xff]  ;;  %v311_v60 = vld [vmem:[%s1158_s5 + $0x150] sm:$0xff] }
  0x69   : > { %v740_v9 = vpop.eup %739  ;;  %472 = vst [vmem:[%s1189_s20 + $0x58] sm:$0xff] %v356_v2  ;;  %v360_v10 = vmul.f32 %v738_v5, %v218_v63  ;;  %765 = vrcp.f32 %v296_v0  ;;  %v234_v63 = vld [vmem:[%s1150_s3 + $0xe8] sm:$0xff]  ;;  %v312_v0 = vld [vmem:[%s1158_s5 + $0x158] sm:$0xff] }
  0x6a   : > { %v742_v13 = vpop.eup %741  ;;  %473 = vst [vmem:[%s1189_s20 + $0x60] sm:$0xff] %v358_v6  ;;  %v362_v14 = vmul.f32 %v740_v9, %v219_v3  ;;  %767 = vrcp.f32 %v297_v4  ;;  %v235_v3 = vld [vmem:[%s1150_s3 + $0xf0] sm:$0xff]  ;;  %v313_v4 = vld [vmem:[%s1158_s5 + $0x160] sm:$0xff] }
  0x6b   : > { %v744_v17 = vpop.eup %743  ;;  %474 = vst [vmem:[%s1189_s20 + $0x68] sm:$0xff] %v360_v10  ;;  %v364_v18 = vmul.f32 %v742_v13, %v220_v7  ;;  %769 = vrcp.f32 %v298_v8  ;;  %v236_v7 = vld [vmem:[%s1150_s3 + $0xf8] sm:$0xff]  ;;  %v314_v8 = vld [vmem:[%s1158_s5 + $0x168] sm:$0xff] }
  0x6c   : > { %v746_v21 = vpop.eup %745  ;;  %475 = vst [vmem:[%s1189_s20 + $0x70] sm:$0xff] %v362_v14  ;;  %v366_v22 = vmul.f32 %v744_v17, %v221_v11  ;;  %771 = vrcp.f32 %v299_v12  ;;  %v237_v11 = vld [vmem:[%s1150_s3 + $0x100] sm:$0xff]  ;;  %v315_v12 = vld [vmem:[%s1158_s5 + $0x170] sm:$0xff] }
  0x6d   : > { %v748_v25 = vpop.eup %747  ;;  %476 = vst [vmem:[%s1189_s20 + $0x78] sm:$0xff] %v364_v18  ;;  %v368_v26 = vmul.f32 %v746_v21, %v222_v15  ;;  %773 = vrcp.f32 %v300_v16  ;;  %v238_v15 = vld [vmem:[%s1150_s3 + $0x108] sm:$0xff]  ;;  %v316_v16 = vld [vmem:[%s1158_s5 + $0x178] sm:$0xff] }
  0x6e   : > { %v750_v29 = vpop.eup %749  ;;  %477 = vst [vmem:[%s1189_s20 + $0x80] sm:$0xff] %v366_v22  ;;  %v370_v30 = vmul.f32 %v748_v25, %v223_v19  ;;  %775 = vrcp.f32 %v301_v20  ;;  %v239_v19 = vld [vmem:[%s1150_s3 + $0x110] sm:$0xff]  ;;  %v317_v20 = vld [vmem:[%s1158_s5 + $0x180] sm:$0xff] }
  0x6f   : > { %v752_v33 = vpop.eup %751  ;;  %478 = vst [vmem:[%s1189_s20 + $0x88] sm:$0xff] %v368_v26  ;;  %v372_v34 = vmul.f32 %v750_v29, %v224_v23  ;;  %777 = vrcp.f32 %v302_v24  ;;  %v240_v23 = vld [vmem:[%s1150_s3 + $0x118] sm:$0xff]  ;;  %v318_v24 = vld [vmem:[%s1158_s5 + $0x188] sm:$0xff] }
  0x70   : > { %v754_v37 = vpop.eup %753  ;;  %479 = vst [vmem:[%s1189_s20 + $0x90] sm:$0xff] %v370_v30  ;;  %v374_v38 = vmul.f32 %v752_v33, %v225_v27  ;;  %779 = vrcp.f32 %v303_v28  ;;  %v241_v27 = vld [vmem:[%s1150_s3 + $0x120] sm:$0xff]  ;;  %v319_v28 = vld [vmem:[%s1158_s5 + $0x190] sm:$0xff] }
  0x71   : > { %v756_v41 = vpop.eup %755  ;;  %480 = vst [vmem:[%s1189_s20 + $0x98] sm:$0xff] %v372_v34  ;;  %v376_v42 = vmul.f32 %v754_v37, %v226_v31  ;;  %781 = vrcp.f32 %v304_v32  ;;  %v242_v31 = vld [vmem:[%s1150_s3 + $0x128] sm:$0xff]  ;;  %v320_v32 = vld [vmem:[%s1158_s5 + $0x198] sm:$0xff] }
  0x72   : > { %v758_v45 = vpop.eup %757  ;;  %481 = vst [vmem:[%s1189_s20 + $0xa0] sm:$0xff] %v374_v38  ;;  %v378_v46 = vmul.f32 %v756_v41, %v227_v35  ;;  %783 = vrcp.f32 %v305_v36  ;;  %v243_v35 = vld [vmem:[%s1150_s3 + $0x130] sm:$0xff]  ;;  %v321_v36 = vld [vmem:[%s1158_s5 + $0x1a0] sm:$0xff] }
  0x73   : > { %v760_v49 = vpop.eup %759  ;;  %482 = vst [vmem:[%s1189_s20 + $0xa8] sm:$0xff] %v376_v42  ;;  %v380_v50 = vmul.f32 %v758_v45, %v228_v39  ;;  %785 = vrcp.f32 %v306_v40  ;;  %v244_v39 = vld [vmem:[%s1150_s3 + $0x138] sm:$0xff]  ;;  %v322_v40 = vld [vmem:[%s1158_s5 + $0x1a8] sm:$0xff] }
  0x74   : > { %v762_v53 = vpop.eup %761  ;;  %483 = vst [vmem:[%s1189_s20 + $0xb0] sm:$0xff] %v378_v46  ;;  %v382_v54 = vmul.f32 %v760_v49, %v229_v43  ;;  %787 = vrcp.f32 %v307_v44  ;;  %v245_v43 = vld [vmem:[%s1150_s3 + $0x140] sm:$0xff]  ;;  %v323_v44 = vld [vmem:[%s1158_s5 + $0x1b0] sm:$0xff] }
  0x75   : > { %v764_v57 = vpop.eup %763  ;;  %484 = vst [vmem:[%s1189_s20 + $0xb8] sm:$0xff] %v380_v50  ;;  %v384_v58 = vmul.f32 %v762_v53, %v230_v47  ;;  %789 = vrcp.f32 %v308_v48  ;;  %v246_v47 = vld [vmem:[%s1150_s3 + $0x148] sm:$0xff]  ;;  %v324_v48 = vld [vmem:[%s1158_s5 + $0x1b8] sm:$0xff] }
  0x76   : > { %v766_v61 = vpop.eup %765  ;;  %485 = vst [vmem:[%s1189_s20 + $0xc0] sm:$0xff] %v382_v54  ;;  %v386_v62 = vmul.f32 %v764_v57, %v231_v51  ;;  %791 = vrcp.f32 %v309_v52  ;;  %v247_v51 = vld [vmem:[%s1150_s3 + $0x150] sm:$0xff]  ;;  %v325_v52 = vld [vmem:[%s1158_s5 + $0x1c0] sm:$0xff] }
  0x77   : > { %v768_v1 = vpop.eup %767  ;;  %486 = vst [vmem:[%s1189_s20 + $0xc8] sm:$0xff] %v384_v58  ;;  %v388_v2 = vmul.f32 %v766_v61, %v232_v55  ;;  %793 = vrcp.f32 %v310_v56  ;;  %v248_v55 = vld [vmem:[%s1150_s3 + $0x158] sm:$0xff]  ;;  %v326_v56 = vld [vmem:[%s1158_s5 + $0x1c8] sm:$0xff] }
  0x78   : > { %v770_v5 = vpop.eup %769  ;;  %487 = vst [vmem:[%s1189_s20 + $0xd0] sm:$0xff] %v386_v62  ;;  %v390_v6 = vmul.f32 %v768_v1, %v233_v59  ;;  %795 = vrcp.f32 %v311_v60  ;;  %v249_v59 = vld [vmem:[%s1150_s3 + $0x160] sm:$0xff]  ;;  %v327_v60 = vld [vmem:[%s1158_s5 + $0x1d0] sm:$0xff] }
  0x79   : > { %v772_v9 = vpop.eup %771  ;;  %488 = vst [vmem:[%s1189_s20 + $0xd8] sm:$0xff] %v388_v2  ;;  %v392_v10 = vmul.f32 %v770_v5, %v234_v63  ;;  %797 = vrcp.f32 %v312_v0  ;;  %v250_v63 = vld [vmem:[%s1150_s3 + $0x168] sm:$0xff]  ;;  %v328_v0 = vld [vmem:[%s1158_s5 + $0x1d8] sm:$0xff] }
  0x7a   : > { %v774_v13 = vpop.eup %773  ;;  %489 = vst [vmem:[%s1189_s20 + $0xe0] sm:$0xff] %v390_v6  ;;  %v394_v14 = vmul.f32 %v772_v9, %v235_v3  ;;  %799 = vrcp.f32 %v313_v4  ;;  %v251_v3 = vld [vmem:[%s1150_s3 + $0x170] sm:$0xff]  ;;  %v329_v4 = vld [vmem:[%s1158_s5 + $0x1e0] sm:$0xff] }
  0x7b   : > { %v776_v17 = vpop.eup %775  ;;  %490 = vst [vmem:[%s1189_s20 + $0xe8] sm:$0xff] %v392_v10  ;;  %v396_v18 = vmul.f32 %v774_v13, %v236_v7  ;;  %801 = vrcp.f32 %v314_v8  ;;  %v252_v7 = vld [vmem:[%s1150_s3 + $0x178] sm:$0xff]  ;;  %v330_v8 = vld [vmem:[%s1158_s5 + $0x1e8] sm:$0xff] }
  0x7c   : > { %v778_v21 = vpop.eup %777  ;;  %491 = vst [vmem:[%s1189_s20 + $0xf0] sm:$0xff] %v394_v14  ;;  %v398_v22 = vmul.f32 %v776_v17, %v237_v11  ;;  %803 = vrcp.f32 %v315_v12  ;;  %v253_v11 = vld [vmem:[%s1150_s3 + $0x180] sm:$0xff]  ;;  %v331_v12 = vld [vmem:[%s1158_s5 + $0x1f0] sm:$0xff] }
  0x7d   : > { %v780_v25 = vpop.eup %779  ;;  %492 = vst [vmem:[%s1189_s20 + $0xf8] sm:$0xff] %v396_v18  ;;  %v400_v26 = vmul.f32 %v778_v21, %v238_v15  ;;  %805 = vrcp.f32 %v316_v16  ;;  %v254_v15 = vld [vmem:[%s1150_s3 + $0x188] sm:$0xff]  ;;  %v332_v16 = vld [vmem:[%s1158_s5 + $0x1f8] sm:$0xff] }
  0x7e   : > { %v782_v29 = vpop.eup %781  ;;  %493 = vst [vmem:[%s1189_s20 + $0x100] sm:$0xff] %v398_v22  ;;  %v402_v30 = vmul.f32 %v780_v25, %v239_v19  ;;  %807 = vrcp.f32 %v317_v20  ;;  %v255_v19 = vld [vmem:[%s1150_s3 + $0x190] sm:$0xff]  ;;  %v256_v22 = vld [vmem:[%s1150_s3 + $0x198] sm:$0xff]  ;;  %v257_v25 = vld [vmem:[%s1150_s3 + $0x1a0] sm:$0xff] }
  0x7f   : > { %v784_v33 = vpop.eup %783  ;;  %494 = vst [vmem:[%s1189_s20 + $0x108] sm:$0xff] %v400_v26  ;;  %v404_v34 = vmul.f32 %v782_v29, %v240_v23  ;;  %809 = vrcp.f32 %v318_v24 }
  0x80   : > { %v786_v37 = vpop.eup %785  ;;  %495 = vst [vmem:[%s1189_s20 + $0x110] sm:$0xff] %v402_v30  ;;  %v406_v38 = vmul.f32 %v784_v33, %v241_v27  ;;  %811 = vrcp.f32 %v319_v28  ;;  %v258_v28 = vld [vmem:[%s1150_s3 + $0x1a8] sm:$0xff] }
  0x81   : > { %v788_v41 = vpop.eup %787  ;;  %496 = vst [vmem:[%s1189_s20 + $0x118] sm:$0xff] %v404_v34  ;;  %v408_v42 = vmul.f32 %v786_v37, %v242_v31  ;;  %813 = vrcp.f32 %v320_v32  ;;  %v259_v31 = vld [vmem:[%s1150_s3 + $0x1b0] sm:$0xff]  ;;  %v260_v34 = vld [vmem:[%s1150_s3 + $0x1b8] sm:$0xff]  ;;  %v261_v37 = vld [vmem:[%s1150_s3 + $0x1c0] sm:$0xff] }
  0x82   : > { %v790_v45 = vpop.eup %789  ;;  %497 = vst [vmem:[%s1189_s20 + $0x120] sm:$0xff] %v406_v38  ;;  %v410_v46 = vmul.f32 %v788_v41, %v243_v35  ;;  %815 = vrcp.f32 %v321_v36 }
  0x83   : > { %v792_v49 = vpop.eup %791  ;;  %498 = vst [vmem:[%s1189_s20 + $0x128] sm:$0xff] %v408_v42  ;;  %v412_v50 = vmul.f32 %v790_v45, %v244_v39  ;;  %817 = vrcp.f32 %v322_v40  ;;  %v262_v40 = vld [vmem:[%s1150_s3 + $0x1c8] sm:$0xff] }
  0x84   : > { %v794_v53 = vpop.eup %793  ;;  %499 = vst [vmem:[%s1189_s20 + $0x130] sm:$0xff] %v410_v46  ;;  %v414_v54 = vmul.f32 %v792_v49, %v245_v43  ;;  %819 = vrcp.f32 %v323_v44  ;;  %v263_v43 = vld [vmem:[%s1150_s3 + $0x1d0] sm:$0xff]  ;;  %v264_v46 = vld [vmem:[%s1150_s3 + $0x1d8] sm:$0xff]  ;;  %v265_v49 = vld [vmem:[%s1150_s3 + $0x1e0] sm:$0xff] }
  0x85   : > { %v796_v57 = vpop.eup %795  ;;  %500 = vst [vmem:[%s1189_s20 + $0x138] sm:$0xff] %v412_v50  ;;  %v416_v58 = vmul.f32 %v794_v53, %v246_v47  ;;  %821 = vrcp.f32 %v324_v48 }
  0x86   : > { %v798_v61 = vpop.eup %797  ;;  %501 = vst [vmem:[%s1189_s20 + $0x140] sm:$0xff] %v414_v54  ;;  %v418_v62 = vmul.f32 %v796_v57, %v247_v51  ;;  %823 = vrcp.f32 %v325_v52  ;;  %v266_v52 = vld [vmem:[%s1150_s3 + $0x1e8] sm:$0xff] }
  0x87   : > { %v800_v1 = vpop.eup %799  ;;  %502 = vst [vmem:[%s1189_s20 + $0x148] sm:$0xff] %v416_v58  ;;  %v420_v2 = vmul.f32 %v798_v61, %v248_v55  ;;  %825 = vrcp.f32 %v326_v56  ;;  %v267_v55 = vld [vmem:[%s1150_s3 + $0x1f0] sm:$0xff]  ;;  %v268_v58 = vld [vmem:[%s1150_s3 + $0x1f8] sm:$0xff] }
  0x88   : > { %v802_v5 = vpop.eup %801  ;;  %503 = vst [vmem:[%s1189_s20 + $0x150] sm:$0xff] %v418_v62  ;;  %v422_v6 = vmul.f32 %v800_v1, %v249_v59  ;;  %827 = vrcp.f32 %v327_v60 }
  0x89   : > { %v804_v9 = vpop.eup %803  ;;  %504 = vst [vmem:[%s1189_s20 + $0x158] sm:$0xff] %v420_v2  ;;  %v424_v10 = vmul.f32 %v802_v5, %v250_v63  ;;  %829 = vrcp.f32 %v328_v0 }
  0x8a   : > { %v806_v13 = vpop.eup %805  ;;  %505 = vst [vmem:[%s1189_s20 + $0x160] sm:$0xff] %v422_v6  ;;  %v426_v14 = vmul.f32 %v804_v9, %v251_v3  ;;  %831 = vrcp.f32 %v329_v4 }
  0x8b   : > { %v808_v17 = vpop.eup %807  ;;  %506 = vst [vmem:[%s1189_s20 + $0x168] sm:$0xff] %v424_v10  ;;  %v428_v18 = vmul.f32 %v806_v13, %v252_v7  ;;  %833 = vrcp.f32 %v330_v8 }
  0x8c   : > { %v810_v20 = vpop.eup %809  ;;  %507 = vst [vmem:[%s1189_s20 + $0x170] sm:$0xff] %v426_v14  ;;  %v430_v21 = vmul.f32 %v808_v17, %v253_v11  ;;  %835 = vrcp.f32 %v331_v12 }
  0x8d   : > { %v812_v23 = vpop.eup %811  ;;  %508 = vst [vmem:[%s1189_s20 + $0x178] sm:$0xff] %v428_v18  ;;  %v432_v24 = vmul.f32 %v810_v20, %v254_v15  ;;  %837 = vrcp.f32 %v332_v16 }
  0x8e   : > { %v814_v26 = vpop.eup %813  ;;  %509 = vst [vmem:[%s1189_s20 + $0x180] sm:$0xff] %v430_v21  ;;  %v434_v27 = vmul.f32 %v812_v23, %v255_v19 }
  0x8f   : > { %v816_v29 = vpop.eup %815  ;;  %510 = vst [vmem:[%s1189_s20 + $0x188] sm:$0xff] %v432_v24  ;;  %v436_v30 = vmul.f32 %v814_v26, %v256_v22 }
  0x90   : > { %v818_v32 = vpop.eup %817  ;;  %511 = vst [vmem:[%s1189_s20 + $0x190] sm:$0xff] %v434_v27  ;;  %v438_v33 = vmul.f32 %v816_v29, %v257_v25 }
  0x91   : > { %v820_v35 = vpop.eup %819  ;;  %512 = vst [vmem:[%s1189_s20 + $0x198] sm:$0xff] %v436_v30  ;;  %v440_v36 = vmul.f32 %v818_v32, %v258_v28 }
  0x92   : > { %v822_v38 = vpop.eup %821  ;;  %513 = vst [vmem:[%s1189_s20 + $0x1a0] sm:$0xff] %v438_v33  ;;  %v442_v39 = vmul.f32 %v820_v35, %v259_v31 }
  0x93   : > { %v824_v41 = vpop.eup %823  ;;  %514 = vst [vmem:[%s1189_s20 + $0x1a8] sm:$0xff] %v440_v36  ;;  %v444_v42 = vmul.f32 %v822_v38, %v260_v34 }
  0x94   : > { %v826_v44 = vpop.eup %825  ;;  %515 = vst [vmem:[%s1189_s20 + $0x1b0] sm:$0xff] %v442_v39  ;;  %v446_v45 = vmul.f32 %v824_v41, %v261_v37 }
  0x95   : > { %v828_v47 = vpop.eup %827  ;;  %516 = vst [vmem:[%s1189_s20 + $0x1b8] sm:$0xff] %v444_v42  ;;  %v448_v48 = vmul.f32 %v826_v44, %v262_v40 }
  0x96   : > { %v830_v50 = vpop.eup %829  ;;  %517 = vst [vmem:[%s1189_s20 + $0x1c0] sm:$0xff] %v446_v45  ;;  %v450_v51 = vmul.f32 %v828_v47, %v263_v43 }
  0x97   : > { %v832_v53 = vpop.eup %831  ;;  %518 = vst [vmem:[%s1189_s20 + $0x1c8] sm:$0xff] %v448_v48  ;;  %v452_v54 = vmul.f32 %v830_v50, %v264_v46 }
  0x98   : > { %v834_v56 = vpop.eup %833  ;;  %519 = vst [vmem:[%s1189_s20 + $0x1d0] sm:$0xff] %v450_v51  ;;  %v454_v57 = vmul.f32 %v832_v53, %v265_v49 }
  0x99   : > { %v836_v59 = vpop.eup %835  ;;  %520 = vst [vmem:[%s1189_s20 + $0x1d8] sm:$0xff] %v452_v54  ;;  %v456_v60 = vmul.f32 %v834_v56, %v266_v52 }
  0x9a   : > { %v838_v61 = vpop.eup %837  ;;  %521 = vst [vmem:[%s1189_s20 + $0x1e0] sm:$0xff] %v454_v57  ;;  %v458_v62 = vmul.f32 %v836_v59, %v267_v55 }
  0x9b   : > { %522 = vst [vmem:[%s1189_s20 + $0x1e8] sm:$0xff] %v456_v60  ;;  %v460_v63 = vmul.f32 %v838_v61, %v268_v58 }
  0x9c   : > { %523 = vst [vmem:[%s1189_s20 + $0x1f0] sm:$0xff] %v458_v62 }
  0x9d   : > { %524 = vst [vmem:[%s1189_s20 + $0x1f8] sm:$0xff] %v460_v63 }
  0x9e   : > { %908 = shalt.err (!%p905_p4)
}
  0x9f   : > { %s909_s25 = scalar_lea.hbm %s1361_s19, 8192  ;;  %s913_s30 = scalar_lea.hbm %s1411_s2, 16384 }
  0xa0   : > { %p910_p9 = scmp.ne.s32.totalorder %s1361_s19, %s909_s25  ;;  %p914_p5 = scmp.lt.s32.totalorder %s1361_s19, %s1411_s2 }
  0xa1   : > { %p915_p8 = scmp.lt.s32.totalorder %s913_s30, %s909_s25 }
  0xa2   : > { %p911_p11 = pnand %p910_p9, %p1421_p1 }
  0xa3   : > { %p916_p6 = por %p915_p8, %p914_p5 }
  0xa4   : > { %p912_p3 = pneg %p911_p11 }
  0xa6   : > { %p917_p13 = pnand %p916_p6, %p912_p3 }
  0xa8   : > { %920 = shalt.err (!%p917_p13)
}
  0xa9   : > { %s970_s29 = smov 128   ;;  %s971_s5 = smov 8  }
  0xaa   : > { %660 = dma.vmem_to_hbm [thread:$0]  (%p1421_p1), %s1363_s14, 8192, %s1361_s19, %s526_s13, %s970_s29, %s970_s29, %s971_s5  }
  0xab PF: > { %s554_s20 = sand.u32 1, %s951_s9   ;;  %p1422_p12 = scmp.ne.s32.totalorder %s1417_s22, 0 }
  0xac   : > { %p1423_p7 = scmp.ge.s32.totalorder %s963_s12, 2  ;;  %s555_s6 = scalar_lea.sflag [#allocation4], %s554_s20 }
  0xae   : > { %p670_p10 = pnand %p1423_p7, %p1422_p12 }
  0xb0   : > { %p671_p0 = pneg %p670_p10 }
  0xb2   : > { %946 = dma.done.wait (%p671_p0), %s555_s6, 8192  }
  0xb3   : > { %948 = vsyncadd (%p671_p0), %s555_s6, 4294959104  ;;  %p18_p2 = scmp.ge.s32.totalorder %s1012_s15, 4   ;;  %s1424_s9 = smov %s955_s10 }
  0xb4   : > { %s1425_s10 = smov %s959_s11  ;;  %s1426_s11 = smov %s1024_s18 }
  0xb5   : > { %s1427_s12 = smov %s1012_s15  ;;  %20 = sbr.rel (!%p18_p2) target bundleno = 7 (0x7), region = 86 }
  0xba   :  { %560 = vsyncpa [#allocation3], 1 }
  0xbb   :  { %562 = vsyncpa [#allocation3 + $0x1], 1 }
  0xbc   :  { %563 = vsyncpa [#allocation6], 1 }
  0xbd   :  { %565 = vsyncpa [#allocation6 + $0x1], 1 }
  0xbe   :  { %566 = vsyncpa [#allocation4], 1 }
  0xbf   :  { %568 = vsyncpa [#allocation4 + $0x1], 1 }

</bundles_post_ra>
